<compile_context>
chip_gen: v7x
topology: tpu7x:2x2x1
jax: 0.10.0
libtpu: 0.0.40
codegen_flags: <defaults>
</compile_context>

<pallas_src>
import functools

import jax
import jax.numpy as jnp
from jax.experimental import pallas as pl
from jax.experimental.pallas import tpu as pltpu


def _round_up(x, m):
    return ((x + m - 1) // m) * m


def cbow_kernel(idx_ref, emb_ref, w1_ref, b1_ref, w2_ref, b2_ref, out_ref,
                *, vocab, context):
    """One batch-tile of the CBOW forward pass.

    idx_ref : (TB, C)   int32 token indices (VMEM)
    emb_ref : (Vp, Dp)  f32 embedding table (zero-padded)
    w1_ref  : (Dp, Hp), b1_ref: (1, Hp)
    w2_ref  : (Hp, Vp), b2_ref: (1, Vp)
    out_ref : (TB, Vp)  log-probs for this batch tile (padded cols sliced off
                        by the wrapper)
    """
    tb = out_ref.shape[0]
    vp = emb_ref.shape[0]

    # Build a per-row bag-of-words count matrix on the VPU:
    #   counts[b, v] = #{ c : idx[b, c] == v }
    # C lane-iota compares; no scalar-indexed gather, no VMEM scratch.
    vocab_iota = jax.lax.broadcasted_iota(jnp.int32, (tb, vp), 1)   # (TB, Vp)
    counts = jnp.zeros((tb, vp), jnp.float32)
    for c in range(context):
        idx_c = idx_ref[:, c:c + 1]                                 # (TB, 1)
        counts = counts + (vocab_iota == idx_c).astype(jnp.float32)

    # Gather + context-sum collapsed into one MXU pass: (TB,Vp) @ (Vp,Dp).
    summed = jnp.dot(counts, emb_ref[...],
                     preferred_element_type=jnp.float32)            # (TB, Dp)

    # linear1 -> linear2 (no nonlinearity in the reference model)
    h = jnp.dot(summed, w1_ref[...],
                preferred_element_type=jnp.float32) + b1_ref[...]   # (TB, Hp)
    logits = jnp.dot(h, w2_ref[...],
                     preferred_element_type=jnp.float32) + b2_ref[...]  # (TB, Vp)

    # Mask padded vocab lanes so they never win the max / feed the exp-sum.
    if vp > vocab:
        lane = jax.lax.broadcasted_iota(jnp.int32, (tb, vp), 1)
        logits = jnp.where(lane < vocab, logits, jnp.float32(-1e30))

    # Numerically stable log_softmax along the vocab axis.
    m = jnp.max(logits, axis=-1, keepdims=True)
    z = logits - m
    lse = jnp.log(jnp.sum(jnp.exp(z), axis=-1, keepdims=True))
    out_ref[...] = z - lse


def cbow_forward(indices, emb_table, w1, b1, w2, b2, *, batch_tile=None):
    B, C = indices.shape
    V, D = emb_table.shape
    H = w1.shape[1]

    # Single grid step for small batches (per-step overhead ~0.35 us); only
    # tile the batch once each tile carries substantial work.
    if batch_tile is None:
        batch_tile = B if B <= 256 else 128
    assert B % batch_tile == 0, "batch must be a multiple of batch_tile"
    assert batch_tile == B or batch_tile % 8 == 0, \
        "partial batch tiles must be a multiple of 8 rows"
    n_tiles = B // batch_tile

    # Pad V / D / H up to lane-dense multiples of 128. Padded weight entries
    # are zero, so they contribute nothing; padded logit columns are masked
    # in-kernel before the log_softmax and sliced off below.
    Vp = _round_up(V, 128)
    Dp = _round_up(D, 128)
    Hp = _round_up(H, 128)

    f32 = jnp.float32
    emb_p = jnp.zeros((Vp, Dp), f32).at[:V, :D].set(emb_table.astype(f32))
    w1_p = jnp.zeros((Dp, Hp), f32).at[:D, :H].set(w1.astype(f32))
    b1_p = jnp.zeros((1, Hp), f32).at[:, :H].set(b1.reshape(1, H).astype(f32))
    w2_p = jnp.zeros((Hp, Vp), f32).at[:H, :V].set(w2.astype(f32))
    b2_p = jnp.zeros((1, Vp), f32).at[:, :V].set(b2.reshape(1, V).astype(f32))

    kernel = functools.partial(cbow_kernel, vocab=V, context=C)

    out_padded = pl.pallas_call(
        kernel,
        out_shape=jax.ShapeDtypeStruct((B, Vp), f32),
        grid=(n_tiles,),
        in_specs=[
            pl.BlockSpec((batch_tile, C), lambda i: (i, 0)),   # token indices
            pl.BlockSpec((Vp, Dp), lambda i: (0, 0)),          # embedding table
            pl.BlockSpec((Dp, Hp), lambda i: (0, 0)),          # w1
            pl.BlockSpec((1, Hp), lambda i: (0, 0)),           # b1
            pl.BlockSpec((Hp, Vp), lambda i: (0, 0)),          # w2
            pl.BlockSpec((1, Vp), lambda i: (0, 0)),           # b2
        ],
        out_specs=pl.BlockSpec((batch_tile, Vp), lambda i: (i, 0)),
        compiler_params=pltpu.CompilerParams(
            dimension_semantics=("parallel",)),  # shard batch tiles on v7x
    )(indices.astype(jnp.int32), emb_p, w1_p, b1_p, w2_p, b2_p)

    return out_padded[:, :V]


def reference_forward(indices, emb_table, w1, b1, w2, b2):
    em = emb_table[indices]                   # (B, C, D)
    embeds = jnp.sum(em, axis=1)              # (B, D)
    out = embeds @ w1 + b1
    out = out @ w2 + b2
    return jax.nn.log_softmax(out, axis=-1)


if __name__ == "__main__":
    vocab_size = 64
    embedding_dim = 32
    hidden = 128
    batch = 16
    context = 4

    key = jax.random.PRNGKey(0)
    k_idx, k_emb, k_w1, k_b1, k_w2, k_b2 = jax.random.split(key, 6)

    indices = jax.random.randint(k_idx, (batch, context), 0, vocab_size,
                                 dtype=jnp.int32)
    emb_table = jax.random.normal(k_emb, (vocab_size, embedding_dim),
                                  dtype=jnp.float32)
    w1 = jax.random.normal(k_w1, (embedding_dim, hidden),
                           dtype=jnp.float32) * 0.1
    b1 = jax.random.normal(k_b1, (hidden,), dtype=jnp.float32) * 0.1
    w2 = jax.random.normal(k_w2, (hidden, vocab_size),
                           dtype=jnp.float32) * 0.1
    b2 = jax.random.normal(k_b2, (vocab_size,), dtype=jnp.float32) * 0.1

    # batch_tile defaults to B -> grid=(1,): a single grid step.
    log_probs = cbow_forward(indices, emb_table, w1, b1, w2, b2)
    jax.block_until_ready(log_probs)

    ref = reference_forward(indices, emb_table, w1, b1, w2, b2)
    assert log_probs.shape == (batch, vocab_size)
    assert jnp.allclose(log_probs, ref, atol=1e-4, rtol=1e-4)

    print("KERNEL_OK")
</pallas_src>

<mosaic_0001>
module attributes {stable_mosaic.version = 11 : i64} {
  func.func @cbow_kernel(%arg0: i32, %arg1: memref<16x4xi32, #tpu.memory_space<vmem>>, %arg2: memref<128x128xf32, #tpu.memory_space<vmem>>, %arg3: memref<128x128xf32, #tpu.memory_space<vmem>>, %arg4: memref<1x128xf32, #tpu.memory_space<vmem>>, %arg5: memref<128x128xf32, #tpu.memory_space<vmem>>, %arg6: memref<1x128xf32, #tpu.memory_space<vmem>>, %arg7: memref<16x128xf32, #tpu.memory_space<vmem>>) attributes {dimension_semantics = [#tpu.dimension_semantics<parallel>], iteration_bounds = array<i64: 1>, scalar_prefetch = 0 : i64, scratch_operands = 0 : i64, tpu.core_type = #tpu.core_type<tc>, window_params = [{transform_indices = @transform_0, window_bounds = array<i64: 16, 4>}, {pipeline_mode = #tpu.pipeline_mode<synchronous>, transform_indices = @transform_1, window_bounds = array<i64: 128, 128>}, {pipeline_mode = #tpu.pipeline_mode<synchronous>, transform_indices = @transform_2, window_bounds = array<i64: 128, 128>}, {pipeline_mode = #tpu.pipeline_mode<synchronous>, transform_indices = @transform_3, window_bounds = array<i64: 1, 128>}, {pipeline_mode = #tpu.pipeline_mode<synchronous>, transform_indices = @transform_4, window_bounds = array<i64: 128, 128>}, {pipeline_mode = #tpu.pipeline_mode<synchronous>, transform_indices = @transform_5, window_bounds = array<i64: 1, 128>}, {transform_indices = @transform_6, window_bounds = array<i64: 16, 128>}]} {
    %0 = tpu.iota {dimensions = array<i32: 1>} : vector<16x128xi32>
    %cst = arith.constant 0.000000e+00 : f32
    %1 = vector.broadcast %cst : f32 to vector<16x128xf32>
    %c0 = arith.constant 0 : index
    %c0_0 = arith.constant 0 : index
    %2 = vector.load %arg1[%c0, %c0_0] : memref<16x4xi32, #tpu.memory_space<vmem>>, vector<16x1xi32>
    %3 = vector.broadcast %2 : vector<16x1xi32> to vector<16x128xi32>
    %4 = arith.cmpi eq, %0, %3 : vector<16x128xi32>
    %5 = arith.extui %4 : vector<16x128xi1> to vector<16x128xi32>
    %6 = arith.sitofp %5 : vector<16x128xi32> to vector<16x128xf32>
    %7 = arith.addf %1, %6 : vector<16x128xf32>
    %c0_1 = arith.constant 0 : index
    %c1 = arith.constant 1 : index
    %8 = vector.load %arg1[%c0_1, %c1] : memref<16x4xi32, #tpu.memory_space<vmem>>, vector<16x1xi32>
    %9 = vector.broadcast %8 : vector<16x1xi32> to vector<16x128xi32>
    %10 = arith.cmpi eq, %0, %9 : vector<16x128xi32>
    %11 = arith.extui %10 : vector<16x128xi1> to vector<16x128xi32>
    %12 = arith.sitofp %11 : vector<16x128xi32> to vector<16x128xf32>
    %13 = arith.addf %7, %12 : vector<16x128xf32>
    %c0_2 = arith.constant 0 : index
    %c2 = arith.constant 2 : index
    %14 = vector.load %arg1[%c0_2, %c2] : memref<16x4xi32, #tpu.memory_space<vmem>>, vector<16x1xi32>
    %15 = vector.broadcast %14 : vector<16x1xi32> to vector<16x128xi32>
    %16 = arith.cmpi eq, %0, %15 : vector<16x128xi32>
    %17 = arith.extui %16 : vector<16x128xi1> to vector<16x128xi32>
    %18 = arith.sitofp %17 : vector<16x128xi32> to vector<16x128xf32>
    %19 = arith.addf %13, %18 : vector<16x128xf32>
    %c0_3 = arith.constant 0 : index
    %c3 = arith.constant 3 : index
    %20 = vector.load %arg1[%c0_3, %c3] : memref<16x4xi32, #tpu.memory_space<vmem>>, vector<16x1xi32>
    %21 = vector.broadcast %20 : vector<16x1xi32> to vector<16x128xi32>
    %22 = arith.cmpi eq, %0, %21 : vector<16x128xi32>
    %23 = arith.extui %22 : vector<16x128xi1> to vector<16x128xi32>
    %24 = arith.sitofp %23 : vector<16x128xi32> to vector<16x128xf32>
    %25 = arith.addf %19, %24 : vector<16x128xf32>
    %c0_4 = arith.constant 0 : index
    %c0_5 = arith.constant 0 : index
    %26 = vector.load %arg2[%c0_4, %c0_5] : memref<128x128xf32, #tpu.memory_space<vmem>>, vector<128x128xf32>
    %cst_6 = arith.constant dense<0.000000e+00> : vector<16x128xf32>
    %27 = tpu.matmul %25, %26, %cst_6 {dimension_numbers = #tpu.dot_dimension_numbers<[1], [0], [0], [1], [0, 0, 1, 1], [], []>} : vector<16x128xf32>, vector<128x128xf32>, vector<16x128xf32> -> vector<16x128xf32>
    %c0_7 = arith.constant 0 : index
    %c0_8 = arith.constant 0 : index
    %28 = vector.load %arg3[%c0_7, %c0_8] : memref<128x128xf32, #tpu.memory_space<vmem>>, vector<128x128xf32>
    %cst_9 = arith.constant dense<0.000000e+00> : vector<16x128xf32>
    %29 = tpu.matmul %27, %28, %cst_9 {dimension_numbers = #tpu.dot_dimension_numbers<[1], [0], [0], [1], [0, 0, 1, 1], [], []>} : vector<16x128xf32>, vector<128x128xf32>, vector<16x128xf32> -> vector<16x128xf32>
    %c0_10 = arith.constant 0 : index
    %c0_11 = arith.constant 0 : index
    %30 = vector.load %arg4[%c0_10, %c0_11] : memref<1x128xf32, #tpu.memory_space<vmem>>, vector<1x128xf32>
    %31 = vector.broadcast %30 : vector<1x128xf32> to vector<16x128xf32>
    %32 = arith.addf %29, %31 : vector<16x128xf32>
    %c0_12 = arith.constant 0 : index
    %c0_13 = arith.constant 0 : index
    %33 = vector.load %arg5[%c0_12, %c0_13] : memref<128x128xf32, #tpu.memory_space<vmem>>, vector<128x128xf32>
    %cst_14 = arith.constant dense<0.000000e+00> : vector<16x128xf32>
    %34 = tpu.matmul %32, %33, %cst_14 {dimension_numbers = #tpu.dot_dimension_numbers<[1], [0], [0], [1], [0, 0, 1, 1], [], []>} : vector<16x128xf32>, vector<128x128xf32>, vector<16x128xf32> -> vector<16x128xf32>
    %c0_15 = arith.constant 0 : index
    %c0_16 = arith.constant 0 : index
    %35 = vector.load %arg6[%c0_15, %c0_16] : memref<1x128xf32, #tpu.memory_space<vmem>>, vector<1x128xf32>
    %36 = vector.broadcast %35 : vector<1x128xf32> to vector<16x128xf32>
    %37 = arith.addf %34, %36 : vector<16x128xf32>
    %38 = tpu.iota {dimensions = array<i32: 1>} : vector<16x128xi32>
    %c64_i32 = arith.constant 64 : i32
    %39 = vector.broadcast %c64_i32 : i32 to vector<16x128xi32>
    %40 = arith.cmpi slt, %38, %39 : vector<16x128xi32>
    %cst_17 = arith.constant -1.000000e+30 : f32
    %41 = vector.broadcast %cst_17 : f32 to vector<16x128xf32>
    %42 = arith.select %40, %37, %41 : vector<16x128xi1>, vector<16x128xf32>
    %cst_18 = arith.constant dense<0xFF800000> : vector<16xf32>
    %43 = vector.multi_reduction <maximumf>, %42, %cst_18 [1] : vector<16x128xf32> to vector<16xf32>
    %44 = vector.shape_cast %43 : vector<16xf32> to vector<16x1xf32>
    %45 = vector.broadcast %44 : vector<16x1xf32> to vector<16x128xf32>
    %46 = arith.subf %42, %45 : vector<16x128xf32>
    %47 = math.exp %46 : vector<16x128xf32>
    %cst_19 = arith.constant dense<0.000000e+00> : vector<16xf32>
    %48 = vector.multi_reduction <add>, %47, %cst_19 [1] : vector<16x128xf32> to vector<16xf32>
    %49 = vector.shape_cast %48 : vector<16xf32> to vector<16x1xf32>
    %50 = math.log %49 : vector<16x1xf32>
    %51 = vector.broadcast %50 : vector<16x1xf32> to vector<16x128xf32>
    %52 = arith.subf %46, %51 : vector<16x128xf32>
    %c0_20 = arith.constant 0 : index
    %c0_21 = arith.constant 0 : index
    %53 = vector.load %arg7[%c0_20, %c0_21] : memref<16x128xf32, #tpu.memory_space<vmem>>, vector<16x128xf32>
    tpu.vector_store %arg7[%c0_20, %c0_21], %52 {strides = array<i32>} : memref<16x128xf32, #tpu.memory_space<vmem>>, vector<16x128xf32>,
    return
  }
  func.func @transform_0(%arg0: i32) -> (i32, i32) {
    %c0_i32 = arith.constant 0 : i32
    %c0_i32_0 = arith.constant 0 : i32
    return %arg0, %c0_i32 : i32, i32
  }
  func.func @transform_1(%arg0: i32) -> (i32, i32) {
    %c0_i32 = arith.constant 0 : i32
    %c0_i32_0 = arith.constant 0 : i32
    %c0_i32_1 = arith.constant 0 : i32
    return %c0_i32, %c0_i32_0 : i32, i32
  }
  func.func @transform_2(%arg0: i32) -> (i32, i32) {
    %c0_i32 = arith.constant 0 : i32
    %c0_i32_0 = arith.constant 0 : i32
    %c0_i32_1 = arith.constant 0 : i32
    return %c0_i32, %c0_i32_0 : i32, i32
  }
  func.func @transform_3(%arg0: i32) -> (i32, i32) {
    %c0_i32 = arith.constant 0 : i32
    %c0_i32_0 = arith.constant 0 : i32
    %c0_i32_1 = arith.constant 0 : i32
    return %c0_i32, %c0_i32_0 : i32, i32
  }
  func.func @transform_4(%arg0: i32) -> (i32, i32) {
    %c0_i32 = arith.constant 0 : i32
    %c0_i32_0 = arith.constant 0 : i32
    %c0_i32_1 = arith.constant 0 : i32
    return %c0_i32, %c0_i32_0 : i32, i32
  }
  func.func @transform_5(%arg0: i32) -> (i32, i32) {
    %c0_i32 = arith.constant 0 : i32
    %c0_i32_0 = arith.constant 0 : i32
    %c0_i32_1 = arith.constant 0 : i32
    return %c0_i32, %c0_i32_0 : i32, i32
  }
  func.func @transform_6(%arg0: i32) -> (i32, i32) {
    %c0_i32 = arith.constant 0 : i32
    %c0_i32_0 = arith.constant 0 : i32
    return %arg0, %c0_i32 : i32, i32
  }
}

</mosaic_0001>

<bundles_post_ra>
// kernel: tpu_custom_call.1
= control target key start
LH: loop header
LB: loop body
LE: loop exit
PB: predicated region body
PF: predicated region fallthrough
CT: control target
= control target key end

     0   :  { %11 = vsyncpa [#allocation3], 0  ;;  %s977_s0 = inlined_call_operand.vmem [shape: s32[16,4], index: 0, kind: input, shape index: {}]   ;;  %s978_s1 = inlined_call_operand.hbm [shape: f32[128,128], index: 1, kind: input, shape index: {}]   ;;  %s979_s2 = inlined_call_operand.hbm [shape: f32[128,128], index: 2, kind: input, shape index: {}]   ;;  %s980_s3 = inlined_call_operand.vmem [shape: f32[1,128], index: 3, kind: input, shape index: {}]   ;;  %s981_s4 = inlined_call_operand.hbm [shape: f32[128,128], index: 4, kind: input, shape index: {}]   ;;  %s982_s5 = inlined_call_operand.vmem [shape: f32[1,128], index: 5, kind: input, shape index: {}]   ;;  %s983_s6 = inlined_call_operand.hbm [shape: f32[16,128], index: 6, kind: output, shape index: {}]  }
   0x1   :  { %12 = vsyncpa [#allocation6], 0 }
   0x2   :  { %13 = vsyncpa [#allocation4], 0  ;;  %s841_s21 = smov [#allocation5]   ;;  %s842_s23 = smov [#allocation2]  }
   0x3   :  { %s33_s22 = sshll.u32 %s841_s21, 4  ;;  %s21_s24 = sshll.u32 %s842_s23, 4  ;;  %s34_s22 = int_to_ptr.vmem [resolvable:$true] %s33_s22  ;;  %s887_s24 = int_to_ptr.vmem [resolvable:$true] %s21_s24 }
   0x4   :  { %s747_s27 = scalar_lea.hbm %s979_s2, 2048 }
   0x5   :  { %p748_p0 = scmp.ne.s32.totalorder %s979_s2, %s747_s27  ;;  %p751_p1 = scmp.lt.u32.totalorder %s747_s27, %s979_s2 }
   0x7   :  { %p753_p2 = pnand %p751_p1, %p748_p0 }
   0x9   :  { %756 = shalt.err (!%p753_p2)
}
   0xa   :  { %s757_s8 = scalar_lea.vmem %s34_s22, 2048  ;;  %p762_p4 = scmp.lt.s32.totalorder %s34_s22, %s34_s22 }
   0xb   :  { %p758_p3 = scmp.ne.s32.totalorder %s34_s22, %s757_s8  ;;  %p763_p5 = scmp.lt.s32.totalorder %s757_s8, %s757_s8 }
   0xd   :  { %p764_p6 = por %p763_p5, %p762_p4 }
   0xf   :  { %p765_p7 = pnand %p764_p6, %p758_p3 }
  0x11   :  { %768 = shalt.err (!%p765_p7)
}
  0x12   :  { %s843_s9 = smov 128   ;;  %s844_s10 = smov 8  }
  0x13   :  { %39 = dma.hbm_to_vmem [thread:$0]  %s979_s2, 2048, %s34_s22, [#allocation6], %s843_s9, %s843_s9, %s844_s10  }
  0x14   :  { %s769_s15 = scalar_lea.hbm %s978_s1, 2048 }
  0x15   :  { %p770_p8 = scmp.ne.s32.totalorder %s978_s1, %s769_s15  ;;  %p773_p9 = scmp.lt.u32.totalorder %s769_s15, %s978_s1 }
  0x17   :  { %p775_p10 = pnand %p773_p9, %p770_p8 }
  0x19   :  { %778 = shalt.err (!%p775_p10)
}
  0x1a   :  { %s779_s20 = scalar_lea.vmem %s887_s24, 2048  ;;  %p784_p12 = scmp.lt.s32.totalorder %s887_s24, %s887_s24 }
  0x1b   :  { %p780_p11 = scmp.ne.s32.totalorder %s887_s24, %s779_s20  ;;  %p785_p13 = scmp.lt.s32.totalorder %s779_s20, %s779_s20 }
  0x1d   :  { %p786_p0 = por %p785_p13, %p784_p12 }
  0x1f   :  { %p787_p1 = pnand %p786_p0, %p780_p11 }
  0x21   :  { %790 = shalt.err (!%p787_p1)
}
  0x22   :  { %27 = dma.hbm_to_vmem [thread:$0]  %s978_s1, 2048, %s887_s24, [#allocation3], %s843_s9, %s843_s9, %s844_s10  }
  0x23   :  { %s845_s22 = smov [#allocation7]   ;;  %s791_s27 = scalar_lea.hbm %s981_s4, 2048 }
  0x24   :  { %s47_s23 = sshll.u32 %s845_s22, 4  ;;  %p792_p2 = scmp.ne.s32.totalorder %s981_s4, %s791_s27  ;;  %s48_s23 = int_to_ptr.vmem [resolvable:$true] %s47_s23 }
  0x25   :  { %p795_p3 = scmp.lt.u32.totalorder %s791_s27, %s981_s4 }
  0x27   :  { %p797_p4 = pnand %p795_p3, %p792_p2 }
  0x29   :  { %800 = shalt.err (!%p797_p4)
}
  0x2a   :  { %s801_s8 = scalar_lea.vmem %s48_s23, 2048  ;;  %p806_p6 = scmp.lt.s32.totalorder %s48_s23, %s48_s23 }
  0x2b   :  { %p802_p5 = scmp.ne.s32.totalorder %s48_s23, %s801_s8  ;;  %p807_p7 = scmp.lt.s32.totalorder %s801_s8, %s801_s8 }
  0x2d   :  { %p808_p8 = por %p807_p7, %p806_p6 }
  0x2f   :  { %p809_p9 = pnand %p808_p8, %p802_p5 }
  0x31   :  { %812 = shalt.err (!%p809_p9)
}
  0x32   :  { %53 = dma.hbm_to_vmem [thread:$0]  %s981_s4, 2048, %s48_s23, [#allocation6], %s843_s9, %s843_s9, %s844_s10  }
  0x33   :  { %835 = dma.done.wait [#allocation3], 2048  }
  0x34   :  { %836 = vsyncadd [#allocation3], 4294965248 }
  0x35   :  { %837 = dma.done.wait [#allocation6], 4096  }
  0x36   :  { %838 = vsyncadd [#allocation6], 4294963200  ;;  %v846_v0 = vmov 0   ;;  %v68_v1 = vld [vmem:[%s977_s0 + $0x8] sm:$0xff]  ;;  %v67_v2 = vld [vmem:[%s977_s0] sm:$0xff]  ;;  %v847_v9 = vmov 1   ;;  %v65_v54 = vlaneseq }
  0x37   :  { %733 = vset.pattern.permute.xlu1 %v846_v0  ;;  %731 = vset.pattern.permute.xlu0 %v846_v0  ;;  %v125_v3 = vld [vmem:[#allocation2] sm:$0xff]  ;;  %v126_v4 = vld [vmem:[#allocation2 + $0x8] sm:$0xff]  ;;  %v127_v5 = vld [vmem:[#allocation2 + $0x10] sm:$0xff]  ;;  %v848_v13 = vmov 2   ;;  %v849_v19 = vmov 3   ;;  %v850_v60 = vmov 0.0  }
  0x38   :  { %73 = vperm.xlu1 %733, %v68_v1   ;;  %70 = vperm.xlu0 %731, %v67_v2   ;;  %v128_v6 = vld [vmem:[#allocation2 + $0x18] sm:$0xff]  ;;  %v624_v7 = vpack.c.bf16 %v126_v4, %v125_v3  ;;  %v129_v10 = vld [vmem:[#allocation2 + $0x20] sm:$0xff]  ;;  %v130_v11 = vld [vmem:[#allocation2 + $0x28] sm:$0xff]  ;;  %v945_v57 = vand.u32 127, %v65_v54 }
  0x39   :  { %v628_v8 = vpack.c.bf16 %v128_v6, %v127_v5  ;;  %v632_v12 = vpack.c.bf16 %v130_v11, %v129_v10  ;;  %v131_v14 = vld [vmem:[#allocation2 + $0x30] sm:$0xff]  ;;  %v132_v15 = vld [vmem:[#allocation2 + $0x38] sm:$0xff]  ;;  %v133_v17 = vld [vmem:[#allocation2 + $0x40] sm:$0xff] }
  0x3a   :  { %625 = vmatprep.subr.bf16.mxu0 %v624_v7  ;;  %v636_v16 = vpack.c.bf16 %v132_v15, %v131_v14  ;;  %v134_v18 = vld [vmem:[#allocation2 + $0x48] sm:$0xff]  ;;  %v135_v21 = vld [vmem:[#allocation2 + $0x50] sm:$0xff]  ;;  %v136_v22 = vld [vmem:[#allocation2 + $0x58] sm:$0xff]  ;;  %vm412_vm8 = vcmp.lt.s32.totalorder %v945_v57, 64 }
  0x3b   :  { %627 = vmatpush3.bf16.msra.mxu0 %v624_v7  ;;  %v640_v20 = vpack.c.bf16 %v134_v18, %v133_v17  ;;  %v644_v23 = vpack.c.bf16 %v136_v22, %v135_v21  ;;  %v137_v24 = vld [vmem:[#allocation2 + $0x60] sm:$0xff]  ;;  %v138_v25 = vld [vmem:[#allocation2 + $0x68] sm:$0xff]  ;;  %v218_v28 = vld [vmem:[#allocation5 + $0x10] sm:$0xff] }
  0x3c   :  { %734 = vset.pattern.permute.xlu1 %v847_v9  ;;  %732 = vset.pattern.permute.xlu0 %v847_v9  ;;  %v216_v26 = vld [vmem:[#allocation5] sm:$0xff]  ;;  %v217_v27 = vld [vmem:[#allocation5 + $0x8] sm:$0xff]  ;;  %v648_v29 = vpack.c.bf16 %v138_v25, %v137_v24  ;;  %v139_v30 = vld [vmem:[#allocation2 + $0x70] sm:$0xff] }
  0x3d   :  { %87 = vperm.xlu1 %734, %v68_v1   ;;  %84 = vperm.xlu0 %732, %v67_v2   ;;  %v656_v31 = vpack.c.bf16 %v217_v27, %v216_v26  ;;  %v219_v32 = vld [vmem:[#allocation5 + $0x18] sm:$0xff]  ;;  %v220_v35 = vld [vmem:[#allocation5 + $0x20] sm:$0xff]  ;;  %v221_v36 = vld [vmem:[#allocation5 + $0x28] sm:$0xff] }
  0x3e   :  { %629 = vmatprep.subr.bf16.mxu0 %v628_v8  ;;  %v140_v33 = vld [vmem:[#allocation2 + $0x78] sm:$0xff]  ;;  %v660_v34 = vpack.c.bf16 %v219_v32, %v218_v28  ;;  %v664_v38 = vpack.c.bf16 %v221_v36, %v220_v35  ;;  %v222_v39 = vld [vmem:[#allocation5 + $0x30] sm:$0xff]  ;;  %v224_v42 = vld [vmem:[#allocation5 + $0x40] sm:$0xff] }
  0x3f   :  { %631 = vmatpush3.bf16.msra.mxu0 %v628_v8  ;;  %657 = vmatprep.subr.bf16.mxu1 %v656_v31  ;;  %v652_v37 = vpack.c.bf16 %v140_v33, %v139_v30  ;;  %v223_v40 = vld [vmem:[#allocation5 + $0x38] sm:$0xff]  ;;  %v225_v43 = vld [vmem:[#allocation5 + $0x48] sm:$0xff]  ;;  %v226_v45 = vld [vmem:[#allocation5 + $0x50] sm:$0xff] }
  0x40   :  { %633 = vmatprep.subr.bf16.mxu0 %v632_v12  ;;  %659 = vmatpush3.bf16.msra.mxu1 %v656_v31  ;;  %v668_v41 = vpack.c.bf16 %v223_v40, %v222_v39  ;;  %v672_v44 = vpack.c.bf16 %v225_v43, %v224_v42  ;;  %v227_v46 = vld [vmem:[#allocation5 + $0x58] sm:$0xff]  ;;  %v228_v48 = vld [vmem:[#allocation5 + $0x60] sm:$0xff]  ;;  %v229_v49 = vld [vmem:[#allocation5 + $0x68] sm:$0xff] }
  0x41   :  { %735 = vset.pattern.permute.xlu1 %v848_v13  ;;  %736 = vset.pattern.permute.xlu0 %v848_v13  ;;  %v676_v47 = vpack.c.bf16 %v227_v46, %v226_v45  ;;  %v680_v50 = vpack.c.bf16 %v229_v49, %v228_v48  ;;  %v230_v51 = vld [vmem:[#allocation5 + $0x70] sm:$0xff]  ;;  %v231_v52 = vld [vmem:[#allocation5 + $0x78] sm:$0xff]  ;;  %v314_v15 = vld [vmem:[#allocation7] sm:$0xff] }
  0x42   :  { %98 = vperm.xlu1 %735, %v67_v2   ;;  %101 = vperm.xlu0 %736, %v68_v1   ;;  %v684_v53 = vpack.c.bf16 %v231_v52, %v230_v51  ;;  %v316_v17 = vld [vmem:[#allocation7 + $0x10] sm:$0xff]  ;;  %v318_v21 = vld [vmem:[#allocation7 + $0x20] sm:$0xff]  ;;  %v319_v22 = vld [vmem:[#allocation7 + $0x28] sm:$0xff] }
  0x43   :  { %635 = vmatpush3.bf16.msra.mxu0 %v632_v12  ;;  %661 = vmatprep.subr.bf16.mxu1 %v660_v34  ;;  %v320_v24 = vld [vmem:[#allocation7 + $0x30] sm:$0xff]  ;;  %v321_v25 = vld [vmem:[#allocation7 + $0x38] sm:$0xff]  ;;  %v322_v27 = vld [vmem:[#allocation7 + $0x40] sm:$0xff] }
  0x44   :  { %637 = vmatprep.subr.bf16.mxu0 %v636_v16  ;;  %663 = vmatpush3.bf16.msra.mxu1 %v660_v34  ;;  %v700_v26 = vpack.c.bf16 %v321_v25, %v320_v24  ;;  %v323_v28 = vld [vmem:[#allocation7 + $0x48] sm:$0xff]  ;;  %v324_v30 = vld [vmem:[#allocation7 + $0x50] sm:$0xff]  ;;  %v325_v31 = vld [vmem:[#allocation7 + $0x58] sm:$0xff] }
  0x45   :  { %665 = vmatprep.subr.bf16.mxu1 %v664_v38  ;;  %v708_v32 = vpack.c.bf16 %v325_v31, %v324_v30  ;;  %v326_v33 = vld [vmem:[#allocation7 + $0x60] sm:$0xff]  ;;  %v327_v34 = vld [vmem:[#allocation7 + $0x68] sm:$0xff]  ;;  %v329_v39 = vld [vmem:[#allocation7 + $0x78] sm:$0xff] }
  0x46   :  { %737 = vset.pattern.permute.xlu1 %v849_v19  ;;  %738 = vset.pattern.permute.xlu0 %v849_v19  ;;  %v317_v19 = vld [vmem:[#allocation7 + $0x18] sm:$0xff]  ;;  %v712_v35 = vpack.c.bf16 %v327_v34, %v326_v33  ;;  %v464_v46 = vld [vmem:[%s982_s5] ss:$0 sm:$0xff] }
  0x47   :  { %112 = vperm.xlu1 %737, %v67_v2   ;;  %639 = vmatpush3.bf16.msra.mxu0 %v636_v16  ;;  %v315_v16 = vld [vmem:[#allocation7 + $0x8] sm:$0xff] }
  0x48   :  { %641 = vmatprep.subr.bf16.mxu0 %v640_v20  ;;  %667 = vmatpush3.bf16.msra.mxu1 %v664_v38  ;;  %v688_v18 = vpack.c.bf16 %v315_v16, %v314_v15  ;;  %v328_v38 = vld [vmem:[#allocation7 + $0x70] sm:$0xff] }
  0x49   :  { %669 = vmatprep.subr.bf16.mxu1 %v668_v41  ;;  %v716_v40 = vpack.c.bf16 %v329_v39, %v328_v38 }
  0x4b   :  { %115 = vperm.xlu1 %737, %v68_v1   ;;  %643 = vmatpush3.bf16.msra.mxu0 %v640_v20  ;;  %v692_v20 = vpack.c.bf16 %v317_v19, %v316_v17 }
  0x4c   :  { %645 = vmatprep.subr.bf16.mxu0 %v644_v23  ;;  %671 = vmatpush3.bf16.msra.mxu1 %v668_v41  ;;  %v463_v41 = vld [vmem:[%s980_s3] ss:$0 sm:$0xff]  ;;  %s851_s3 = smov [#allocation8]  }
  0x4d   :  { %673 = vmatprep.subr.bf16.mxu1 %v672_v44  ;;  %s442_s5 = sshll.u32 %s851_s3, 4  ;;  %s443_s5 = int_to_ptr.vmem [resolvable:$true] %s442_s5 }
  0x4e   :  { %s813_s17 = scalar_lea.vmem %s443_s5, 256  ;;  %p818_p11 = scmp.lt.s32.totalorder %s443_s5, %s443_s5 }
  0x4f   :  { %647 = vmatpush3.bf16.msra.mxu0 %v644_v23  ;;  %v696_v23 = vpack.c.bf16 %v319_v22, %v318_v21  ;;  %p814_p10 = scmp.ne.s32.totalorder %s443_s5, %s813_s17  ;;  %p819_p12 = scmp.lt.s32.totalorder %s813_s17, %s813_s17 }
  0x50   :  { %649 = vmatprep.subr.bf16.mxu0 %v648_v29  ;;  %675 = vmatpush3.bf16.msra.mxu1 %v672_v44 }
  0x51   :  { %677 = vmatprep.subr.bf16.mxu1 %v676_v47  ;;  %p820_p13 = por %p819_p12, %p818_p11 }
  0x53   :  { %651 = vmatpush3.bf16.msra.mxu0 %v648_v29  ;;  %v704_v29 = vpack.c.bf16 %v323_v28, %v322_v27  ;;  %p821_p0 = pnand %p820_p13, %p814_p10 }
  0x54   :  { %653 = vmatprep.subr.bf16.mxu0 %v652_v37  ;;  %679 = vmatpush3.bf16.msra.mxu1 %v676_v47 }
  0x55   :  { %681 = vmatprep.subr.bf16.mxu1 %v680_v50 }
  0x57   :  { %655 = vmatpush3.bf16.msra.mxu0 %v652_v37 }
  0x58   :  { %683 = vmatpush3.bf16.msra.mxu1 %v680_v50  ;;  %689 = vmatprep.subr.bf16.mxu0 %v688_v18 }
  0x59   :  { %685 = vmatprep.subr.bf16.mxu1 %v684_v53 }
  0x5c   :  { %687 = vmatpush3.bf16.msra.mxu1 %v684_v53 }
  0xb7   :  { %v74_v55 = vpop.permute.xlu1 %73  ;;  %v71_v56 = vpop.permute.xlu0 %70 }
  0xb8   :  { %vm75_vm0 = vcmp.eq.s32.totalorder %v945_v57, %v71_v56  ;;  %vm76_vm4 = vcmp.eq.s32.totalorder %v945_v57, %v74_v55 }
  0xb9   :  { %v455_v61 = vsel %vm75_vm0, 1.0, %v850_v60  ;;  %v456_v6 = vsel %vm76_vm4, 1.0, %v850_v60 }
  0xbc   :  { %v88_v58 = vpop.permute.xlu1 %87  ;;  %v85_v59 = vpop.permute.xlu0 %84 }
  0xbd   :  { %vm89_vm1 = vcmp.eq.s32.totalorder %v945_v57, %v85_v59  ;;  %vm90_vm3 = vcmp.eq.s32.totalorder %v945_v57, %v88_v58 }
  0xbe   :  { %v457_v62 = vsel %vm89_vm1, 1.0, %v850_v60  ;;  %v458_v3 = vsel %vm90_vm3, 1.0, %v850_v60 }
  0xbf   :  { %v95_v1 = vadd.f32 %v457_v62, %v455_v61  ;;  %v96_v9 = vadd.f32 %v458_v3, %v456_v6 }
  0xc1   :  { %v99_v63 = vpop.permute.xlu1 %98  ;;  %v102_v0 = vpop.permute.xlu0 %101 }
  0xc2   :  { %vm103_vm2 = vcmp.eq.s32.totalorder %v945_v57, %v99_v63  ;;  %vm104_vm5 = vcmp.eq.s32.totalorder %v945_v57, %v102_v0 }
  0xc3   :  { %v459_v2 = vsel %vm103_vm2, 1.0, %v850_v60  ;;  %v460_v7 = vsel %vm104_vm5, 1.0, %v850_v60 }
  0xc4   :  { %v109_v5 = vadd.f32 %v459_v2, %v95_v1  ;;  %v110_v12 = vadd.f32 %v460_v7, %v96_v9 }
  0xc6   :  { %v113_v4 = vpop.permute.xlu1 %112 }
  0xc7   :  { %vm117_vm6 = vcmp.eq.s32.totalorder %v945_v57, %v113_v4 }
  0xc8   :  { %v461_v8 = vsel %vm117_vm6, 1.0, %v850_v60 }
  0xc9   :  { %v123_v10 = vadd.f32 %v461_v8, %v109_v5 }
  0xca   :  { %v116_v11 = vpop.permute.xlu1 %115 }
  0xcb   :  { %vm118_vm7 = vcmp.eq.s32.totalorder %v945_v57, %v116_v11  ;;  %551 = vmatprep.mubr.f32.mxu0 %v123_v10 }
  0xcc   :  { %v462_v13 = vsel %vm118_vm7, 1.0, %v850_v60 }
  0xcd   :  { %v124_v14 = vadd.f32 %v462_v13, %v110_v12 }
  0xcf   :  { %552 = vmatmul.mubr.f32.vlgmr.msra.gmra.mrb[0].mxu0 %v124_v14 }
  0xd0   :  { %691 = vmatpush3.bf16.msra.mxu0 %v688_v18 }
  0xd1   :  { %693 = vmatprep.subr.bf16.mxu0 %v692_v20 }
  0xd4   :  { %695 = vmatpush3.bf16.msra.mxu0 %v692_v20 }
  0xd5   :  { %697 = vmatprep.subr.bf16.mxu0 %v696_v23 }
  0xd8   :  { %699 = vmatpush3.bf16.msra.mxu0 %v696_v23 }
  0xd9   :  { %701 = vmatprep.subr.bf16.mxu0 %v700_v26 }
  0xdc   :  { %703 = vmatpush3.bf16.msra.mxu0 %v700_v26 }
  0xdd   :  { %705 = vmatprep.subr.bf16.mxu0 %v704_v29 }
  0xe0   :  { %707 = vmatpush3.bf16.msra.mxu0 %v704_v29 }
  0xe1   :  { %709 = vmatprep.subr.bf16.mxu0 %v708_v32 }
  0xe4   :  { %711 = vmatpush3.bf16.msra.mxu0 %v708_v32 }
  0xe5   :  { %713 = vmatprep.subr.bf16.mxu0 %v712_v35 }
  0xe8   :  { %715 = vmatpush3.bf16.msra.mxu0 %v712_v35 }
  0xe9   :  { %717 = vmatprep.subr.bf16.mxu0 %v716_v40 }
  0xec   :  { %719 = vmatpush3.bf16.msra.mxu0 %v716_v40 }
 0x1a2   :  { %v553_v36 = vpop.f32.mrb[0].mxu0 }
 0x1a3   :  { %v207_v37 = vpop.f32.mrb[1].mxu0 }
 0x1a4   :  { %586 = vmatprep.mubr.f32.mxu1 %v207_v37 }
 0x1a5   :  { %587 = vmatmul.mubr.f32.vlgmr.msra.gmra.mrb[0].mxu1 %v553_v36 }
 0x278   :  { %v588_v42 = vpop.f32.mrb[0].mxu1 }
 0x279   :  { %v305_v43 = vpop.f32.mrb[1].mxu1  ;;  %v311_v45 = vadd.f32 %v588_v42, %v463_v41 }
 0x27a   :  { %v306_v44 = vadd.f32 %v463_v41, %v305_v43 }
 0x27c   :  { %621 = vmatprep.mubr.f32.mxu0 %v306_v44 }
 0x27d   :  { %622 = vmatmul.mubr.f32.vlgmr.msra.gmra.mrb[2].mxu0 %v311_v45 }
 0x350   :  { %v623_v47 = vpop.f32.mrb[2].mxu0 }
 0x351   :  { %v409_v48 = vadd.f32 %v623_v47, %v464_v46  ;;  %v403_v49 = vpop.f32.mrb[3].mxu0 }
 0x352   :  { %v404_v50 = vadd.f32 %v464_v46, %v403_v49 }
 0x353   :  { %v414_v51 = vsel %vm412_vm8, %v409_v48, -1e+30 }
 0x354   :  { %417 = vmax.xlane.f32.xlu1 %v414_v51  ;;  %v413_v52 = vsel %vm412_vm8, %v404_v50, -1e+30 }
 0x355   :  { %415 = vmax.xlane.f32.xlu0 %v413_v52 }
 0x3e1   :  { %v418_v53 = vpop.xlane.xlu1 %417 }
 0x3e2   :  { %v416_v54 = vpop.xlane.xlu0 %415  ;;  %v420_v55 = vsub.f32 %v414_v51, %v418_v53 }
 0x3e3   :  { %v419_v56 = vsub.f32 %v413_v52, %v416_v54 }
 0x3e4   :  { %v423_v59 = vmul.f32 1.442695, %v420_v55 }
 0x3e5   :  { %v421_v58 = vmul.f32 1.442695, %v419_v56 }
 0x3e7   :  { %739 = vpow2.f32 %v421_v58 }
 0x3e8   :  { %741 = vpow2.f32 %v423_v59 }
 0x3f1   :  { %v740_v60 = vpop.eup %739 }
 0x3f2   :  { %425 = vadd.xlane.f32.xlu0 %v740_v60  ;;  %v742_v61 = vpop.eup %741 }
 0x3f6   :  { %427 = vadd.xlane.f32.xlu0 %v742_v61 }
 0x47f   :  { %v426_v57 = vpop.xlane.xlu0 %425 }
 0x480   :  { %743 = vlog2.f32 %v426_v57 }
 0x483   :  { %v428_v62 = vpop.xlane.xlu0 %427 }
 0x484   :  { %745 = vlog2.f32 %v428_v62 }
 0x48a   :  { %v744_v63 = vpop.eup %743 }
 0x48b   :  { %v430_v0 = vmul.f32 0.6931472, %v744_v63 }
 0x48d   :  { %v433_v1 = vsub.f32 %v419_v56, %v430_v0 }
 0x48e   :  { %v746_v2 = vpop.eup %745 }
 0x48f   :  { %435 = vst [vmem:[#allocation8] sm:$0xff] %v433_v1  ;;  %v432_v3 = vmul.f32 0.6931472, %v746_v2 }
 0x491   :  { %v434_v4 = vsub.f32 %v420_v55, %v432_v3 }
 0x493   :  { %436 = vst [vmem:[#allocation8 + $0x8] sm:$0xff] %v434_v4 }
 0x494   :  { %824 = shalt.err (!%p821_p0)
}
 0x495   :  { %s825_s20 = scalar_lea.hbm %s983_s6, 256 }
 0x496   :  { %p826_p1 = scmp.ne.s32.totalorder %s983_s6, %s825_s20  ;;  %p829_p2 = scmp.lt.u32.totalorder %s825_s20, %s983_s6 }
 0x498   :  { %p831_p3 = pnand %p829_p2, %p826_p1 }
 0x49a   :  { %834 = shalt.err (!%p831_p3)
}
 0x49b   :  { %448 = dma.vmem_to_hbm [thread:$0]  %s443_s5, 256, %s983_s6, [#allocation4], %s843_s9, %s843_s9, %s844_s10  }
 0x49c   :  { %839 = dma.done.wait [#allocation4], 256  }
 0x49d   :  { %840 = vsyncadd [#allocation4], 4294967040 }
 0x49e   :  { %452 = vsyncpa [#allocation3], 1 }
 0x49f   :  { %453 = vsyncpa [#allocation6], 1 }
 0x4a0   :  { %454 = vsyncpa [#allocation4], 1 }

</bundles_post_ra>
